<compile_context>
chip_gen: v7x
topology: tpu7x:2x2x1
jax: 0.10.0
libtpu: 0.0.40
codegen_flags: <defaults>
</compile_context>

<pallas_src>
import functools

import jax
import jax.numpy as jnp
from jax.experimental import pallas as pl
from jax.experimental.pallas import tpu as pltpu


def _round_up(x, m):
    return (x + m - 1) // m * m


def _elu(x):
    # ELU(alpha=1). Exactly one EUP transcendental (exp) per element; the
    # min / -1 / select stay on the VPU. min clamps the unused branch so the
    # exp never overflows for large positive x.
    return jnp.where(x > 0, x, jnp.exp(jnp.minimum(x, 0.0)) - 1.0)


def _lifted_edge_kernel(feu_ref, fev_ref, w1u_ref, w1v_ref, w2_ref,
                        b1_ref, b2_ref, out_ref):
    """res = ELU(ELU(a@W1+b1)@W2+b2) + ELU(ELU(b@W1+b1)@W2+b2), a/b never built."""
    cdt = w1u_ref.dtype                       # MXU compute dtype (bf16)
    feu = feu_ref[...].astype(cdt)            # in-kernel f32 -> bf16 cast
    fev = fev_ref[...].astype(cdt)
    w1u = w1u_ref[...]                        # W1 rows for first  Cuv inputs, (Cuv, P)
    w1v = w1v_ref[...]                        # W1 rows for second Cuv inputs, (Cuv, P)
    w2 = w2_ref[...]                          # (P, P)
    b1 = b1_ref[...]                          # (1, P) f32
    b2 = b2_ref[...]                          # (1, P) f32

    # First layer via partial matmuls of the implicit concats:
    #   a = [f_eu | f_ev]  ->  f_eu @ W1_top + f_ev @ W1_bot
    #   b = [f_ev | f_eu]  ->  f_ev @ W1_top + f_eu @ W1_bot
    ha = (jnp.dot(feu, w1u, preferred_element_type=jnp.float32)
          + jnp.dot(fev, w1v, preferred_element_type=jnp.float32))
    hb = (jnp.dot(fev, w1u, preferred_element_type=jnp.float32)
          + jnp.dot(feu, w1v, preferred_element_type=jnp.float32))

    # Per-branch bias + ELU (no sublane concat -> no extra VMEM copy).
    ha = _elu(ha + b1).astype(cdt)
    hb = _elu(hb + b1).astype(cdt)

    # Second layer: two dots reusing the same resident W2.
    za = _elu(jnp.dot(ha, w2, preferred_element_type=jnp.float32) + b2)
    zb = _elu(jnp.dot(hb, w2, preferred_element_type=jnp.float32) + b2)

    out_ref[...] = (za + zb).astype(out_ref.dtype)


def init_params(key, in_channels_uv):
    """Parameters with the torch module's shapes, stored transposed as (in, out)."""
    n_in = 2 * in_channels_uv
    n_hidden = n_in
    k1, k2, k3, k4 = jax.random.split(key, 4)
    w1 = jax.random.normal(k1, (n_in, n_hidden), jnp.float32) * 0.1
    b1 = jax.random.normal(k2, (n_hidden,), jnp.float32) * 0.1
    w2 = jax.random.normal(k3, (n_hidden, n_hidden), jnp.float32) * 0.1
    b2 = jax.random.normal(k4, (n_hidden,), jnp.float32) * 0.1
    return (w1, b1, w2, b2)


def prepare_params(params, in_channels_uv, compute_dtype=jnp.bfloat16):
    """One-time prep: split W1 for the implicit concat, pad n_hidden to 128 lanes
    (lane-dense output), cast MXU operands to bf16. Returns arrays only (jit-safe)."""
    w1, b1, w2, b2 = params
    cuv = in_channels_uv
    n_in, n_hid = w1.shape
    assert n_in == 2 * cuv and w2.shape == (n_hid, n_hid)
    # TODO(synk): on v6e/v7x pad to a multiple of 256 when n_hid >= 256
    # (2x256x256 MXU); 128 is optimal on v5e and for these tiny demo sizes.
    p = max(128, _round_up(n_hid, 128))

    w1_p = jnp.zeros((n_in, p), jnp.float32).at[:, :n_hid].set(w1)
    return dict(
        w1u=w1_p[:cuv].astype(compute_dtype),                               # (Cuv, P)
        w1v=w1_p[cuv:].astype(compute_dtype),                               # (Cuv, P)
        w2=jnp.zeros((p, p), jnp.float32).at[:n_hid, :n_hid].set(w2)
        .astype(compute_dtype),                                             # (P, P)
        b1=jnp.zeros((1, p), jnp.float32).at[0, :n_hid].set(b1),            # (1, P)
        b2=jnp.zeros((1, p), jnp.float32).at[0, :n_hid].set(b2),            # (1, P)
    )


@functools.partial(jax.jit, static_argnames=("n_hidden", "tile_n", "unpad"))
def lifted_edge_forward(f_eu, f_ev, prepared, *, n_hidden, tile_n=1024, unpad=True):
    """JAX wrapper reproducing LiftedEdgeModule.forward. Output dtype is bf16."""
    w1u = prepared["w1u"]
    w1v = prepared["w1v"]
    w2 = prepared["w2"]
    b1 = prepared["b1"]
    b2 = prepared["b2"]

    n, cuv = f_eu.shape
    assert f_ev.shape == (n, cuv)
    p = w2.shape[1]
    compute_dtype = w2.dtype

    # Row tile: big tiles amortize the ~0.35us/grid-step overhead, but cap so
    # the grid keeps >= ~8 steps (v7x has 2 TensorCores; also keeps the output
    # DMA hidden behind compute on all generations).
    tn = _round_up(max(tile_n, 16), 16)
    tn = min(tn, max(16, _round_up(pl.cdiv(n, 8), 16)))
    tn = min(tn, _round_up(n, 16))
    grid = (pl.cdiv(n, tn),)

    cbytes = jnp.dtype(compute_dtype).itemsize
    cost = pl.CostEstimate(
        # 4 first-layer dots (K=cuv) + 2 second-layer dots (K=P), mul+add.
        flops=n * (8 * cuv * p + 4 * p * p),
        transcendentals=4 * n * p,                      # one exp per ELU element
        bytes_accessed=(2 * n * cuv * f_eu.dtype.itemsize   # f_eu, f_ev (f32)
                        + n * p * 2                          # bf16 output
                        + (2 * cuv + p) * p * cbytes         # W1, W2
                        + 2 * p * 4),                        # biases
    )

    out_padded = pl.pallas_call(
        _lifted_edge_kernel,
        out_shape=jax.ShapeDtypeStruct((n, p), jnp.bfloat16),
        grid=grid,
        in_specs=[
            pl.BlockSpec((tn, cuv), lambda i: (i, 0)),      # f_eu tile (f32)
            pl.BlockSpec((tn, cuv), lambda i: (i, 0)),      # f_ev tile (f32)
            pl.BlockSpec((cuv, p), lambda i: (0, 0)),       # W1 top half (resident)
            pl.BlockSpec((cuv, p), lambda i: (0, 0)),       # W1 bottom half (resident)
            pl.BlockSpec((p, p), lambda i: (0, 0)),         # W2 (resident)
            pl.BlockSpec((1, p), lambda i: (0, 0)),         # b1
            pl.BlockSpec((1, p), lambda i: (0, 0)),         # b2
        ],
        out_specs=pl.BlockSpec((tn, p), lambda i: (i, 0)),  # lane-dense (P=128k)
        compiler_params=pltpu.CompilerParams(
            dimension_semantics=("parallel",),
            vmem_limit_bytes=32 * 1024 * 1024,
        ),
        cost_estimate=cost,
    )(f_eu, f_ev, w1u, w1v, w2, b1, b2)

    if unpad and n_hidden != p:
        # Demo / drop-in path only: production consumers should take the
        # lane-padded (n, P) layout directly (unpad=False) and skip this
        # extra XLA slice pass.
        return out_padded[:, :n_hidden]
    return out_padded


def _reference_forward(f_eu, f_ev, params, compute_dtype=jnp.bfloat16):
    """Pure-JAX reference with the same bf16 matmul / f32-accumulate casts."""
    w1, b1, w2, b2 = params
    a = jnp.concatenate([f_eu, f_ev], axis=1).astype(compute_dtype)
    b = jnp.concatenate([f_ev, f_eu], axis=1).astype(compute_dtype)
    w1c = w1.astype(compute_dtype)
    w2c = w2.astype(compute_dtype)

    def mlp(x):
        h = _elu(jnp.dot(x, w1c, preferred_element_type=jnp.float32) + b1)
        h = _elu(jnp.dot(h.astype(compute_dtype), w2c,
                         preferred_element_type=jnp.float32) + b2)
        return h

    return mlp(a) + mlp(b)


if __name__ == "__main__":
    in_channels_uv = 6
    n_hidden = 2 * in_channels_uv
    n_edges = 56          # not a multiple of the tile -> exercises the padded last tile

    key = jax.random.PRNGKey(0)
    k_u, k_v, k_p = jax.random.split(key, 3)
    f_eu = jax.random.normal(k_u, (n_edges, in_channels_uv), jnp.float32)
    f_ev = jax.random.normal(k_v, (n_edges, in_channels_uv), jnp.float32)

    params = init_params(k_p, in_channels_uv)
    prepared = prepare_params(params, in_channels_uv, compute_dtype=jnp.bfloat16)

    # Default tile_n=1024 is auto-capped to keep >= ~8 grid steps; with n=56
    # this gives tile 16 and a 4-step grid (exercises pipelining + partial tile).
    out = lifted_edge_forward(f_eu, f_ev, prepared, n_hidden=n_hidden)
    out = jax.block_until_ready(out)

    ref = _reference_forward(f_eu, f_ev, params, compute_dtype=jnp.bfloat16)
    assert out.shape == (n_edges, n_hidden), out.shape
    out_f32 = out.astype(jnp.float32)
    max_err = float(jnp.max(jnp.abs(out_f32 - ref)))
    assert jnp.allclose(out_f32, ref, atol=2e-2, rtol=2e-2), max_err

    print("KERNEL_OK")
</pallas_src>

<mosaic_0001>
module attributes {stable_mosaic.version = 11 : i64} {
  func.func @_lifted_edge_kernel(%arg0: i32, %arg1: memref<16x6xf32, #tpu.memory_space<vmem>>, %arg2: memref<16x6xf32, #tpu.memory_space<vmem>>, %arg3: memref<6x128xbf16, #tpu.memory_space<vmem>>, %arg4: memref<6x128xbf16, #tpu.memory_space<vmem>>, %arg5: memref<128x128xbf16, #tpu.memory_space<vmem>>, %arg6: memref<1x128xf32, #tpu.memory_space<vmem>>, %arg7: memref<1x128xf32, #tpu.memory_space<vmem>>, %arg8: memref<16x128xbf16, #tpu.memory_space<vmem>>) attributes {dimension_semantics = [#tpu.dimension_semantics<parallel>], iteration_bounds = array<i64: 4>, scalar_prefetch = 0 : i64, scratch_operands = 0 : i64, tpu.core_type = #tpu.core_type<tc>, window_params = [{transform_indices = @transform_0, window_bounds = array<i64: 16, 6>}, {transform_indices = @transform_1, window_bounds = array<i64: 16, 6>}, {pipeline_mode = #tpu.pipeline_mode<synchronous>, transform_indices = @transform_2, window_bounds = array<i64: 6, 128>}, {pipeline_mode = #tpu.pipeline_mode<synchronous>, transform_indices = @transform_3, window_bounds = array<i64: 6, 128>}, {pipeline_mode = #tpu.pipeline_mode<synchronous>, transform_indices = @transform_4, window_bounds = array<i64: 128, 128>}, {pipeline_mode = #tpu.pipeline_mode<synchronous>, transform_indices = @transform_5, window_bounds = array<i64: 1, 128>}, {pipeline_mode = #tpu.pipeline_mode<synchronous>, transform_indices = @transform_6, window_bounds = array<i64: 1, 128>}, {transform_indices = @transform_7, window_bounds = array<i64: 16, 128>}]} {
    %c0 = arith.constant 0 : index
    %c0_0 = arith.constant 0 : index
    %0 = vector.load %arg1[%c0, %c0_0] : memref<16x6xf32, #tpu.memory_space<vmem>>, vector<16x6xf32>
    %1 = arith.truncf %0 : vector<16x6xf32> to vector<16x6xbf16>
    %c0_1 = arith.constant 0 : index
    %c0_2 = arith.constant 0 : index
    %2 = vector.load %arg2[%c0_1, %c0_2] : memref<16x6xf32, #tpu.memory_space<vmem>>, vector<16x6xf32>
    %3 = arith.truncf %2 : vector<16x6xf32> to vector<16x6xbf16>
    %c0_3 = arith.constant 0 : index
    %c0_4 = arith.constant 0 : index
    %4 = vector.load %arg3[%c0_3, %c0_4] : memref<6x128xbf16, #tpu.memory_space<vmem>>, vector<6x128xbf16>
    %c0_5 = arith.constant 0 : index
    %c0_6 = arith.constant 0 : index
    %5 = vector.load %arg4[%c0_5, %c0_6] : memref<6x128xbf16, #tpu.memory_space<vmem>>, vector<6x128xbf16>
    %c0_7 = arith.constant 0 : index
    %c0_8 = arith.constant 0 : index
    %6 = vector.load %arg5[%c0_7, %c0_8] : memref<128x128xbf16, #tpu.memory_space<vmem>>, vector<128x128xbf16>
    %c0_9 = arith.constant 0 : index
    %c0_10 = arith.constant 0 : index
    %7 = vector.load %arg6[%c0_9, %c0_10] : memref<1x128xf32, #tpu.memory_space<vmem>>, vector<1x128xf32>
    %c0_11 = arith.constant 0 : index
    %c0_12 = arith.constant 0 : index
    %8 = vector.load %arg7[%c0_11, %c0_12] : memref<1x128xf32, #tpu.memory_space<vmem>>, vector<1x128xf32>
    %cst = arith.constant dense<0.000000e+00> : vector<16x128xf32>
    %9 = tpu.matmul %1, %4, %cst {dimension_numbers = #tpu.dot_dimension_numbers<[1], [0], [0], [1], [0, 0, 1, 1], [], []>} : vector<16x6xbf16>, vector<6x128xbf16>, vector<16x128xf32> -> vector<16x128xf32>
    %cst_13 = arith.constant dense<0.000000e+00> : vector<16x128xf32>
    %10 = tpu.matmul %3, %5, %cst_13 {dimension_numbers = #tpu.dot_dimension_numbers<[1], [0], [0], [1], [0, 0, 1, 1], [], []>} : vector<16x6xbf16>, vector<6x128xbf16>, vector<16x128xf32> -> vector<16x128xf32>
    %11 = arith.addf %9, %10 : vector<16x128xf32>
    %cst_14 = arith.constant dense<0.000000e+00> : vector<16x128xf32>
    %12 = tpu.matmul %3, %4, %cst_14 {dimension_numbers = #tpu.dot_dimension_numbers<[1], [0], [0], [1], [0, 0, 1, 1], [], []>} : vector<16x6xbf16>, vector<6x128xbf16>, vector<16x128xf32> -> vector<16x128xf32>
    %cst_15 = arith.constant dense<0.000000e+00> : vector<16x128xf32>
    %13 = tpu.matmul %1, %5, %cst_15 {dimension_numbers = #tpu.dot_dimension_numbers<[1], [0], [0], [1], [0, 0, 1, 1], [], []>} : vector<16x6xbf16>, vector<6x128xbf16>, vector<16x128xf32> -> vector<16x128xf32>
    %14 = arith.addf %12, %13 : vector<16x128xf32>
    %15 = vector.broadcast %7 : vector<1x128xf32> to vector<16x128xf32>
    %16 = arith.addf %11, %15 : vector<16x128xf32>
    %cst_16 = arith.constant 0.000000e+00 : f32
    %17 = vector.broadcast %cst_16 : f32 to vector<16x128xf32>
    %18 = arith.cmpf ogt, %16, %17 : vector<16x128xf32>
    %cst_17 = arith.constant 0.000000e+00 : f32
    %19 = vector.broadcast %cst_17 : f32 to vector<16x128xf32>
    %20 = arith.minimumf %16, %19 : vector<16x128xf32>
    %21 = math.exp %20 : vector<16x128xf32>
    %cst_18 = arith.constant 1.000000e+00 : f32
    %22 = vector.broadcast %cst_18 : f32 to vector<16x128xf32>
    %23 = arith.subf %21, %22 : vector<16x128xf32>
    %24 = arith.select %18, %16, %23 : vector<16x128xi1>, vector<16x128xf32>
    %25 = arith.truncf %24 : vector<16x128xf32> to vector<16x128xbf16>
    %26 = vector.broadcast %7 : vector<1x128xf32> to vector<16x128xf32>
    %27 = arith.addf %14, %26 : vector<16x128xf32>
    %cst_19 = arith.constant 0.000000e+00 : f32
    %28 = vector.broadcast %cst_19 : f32 to vector<16x128xf32>
    %29 = arith.cmpf ogt, %27, %28 : vector<16x128xf32>
    %cst_20 = arith.constant 0.000000e+00 : f32
    %30 = vector.broadcast %cst_20 : f32 to vector<16x128xf32>
    %31 = arith.minimumf %27, %30 : vector<16x128xf32>
    %32 = math.exp %31 : vector<16x128xf32>
    %cst_21 = arith.constant 1.000000e+00 : f32
    %33 = vector.broadcast %cst_21 : f32 to vector<16x128xf32>
    %34 = arith.subf %32, %33 : vector<16x128xf32>
    %35 = arith.select %29, %27, %34 : vector<16x128xi1>, vector<16x128xf32>
    %36 = arith.truncf %35 : vector<16x128xf32> to vector<16x128xbf16>
    %cst_22 = arith.constant dense<0.000000e+00> : vector<16x128xf32>
    %37 = tpu.matmul %25, %6, %cst_22 {dimension_numbers = #tpu.dot_dimension_numbers<[1], [0], [0], [1], [0, 0, 1, 1], [], []>} : vector<16x128xbf16>, vector<128x128xbf16>, vector<16x128xf32> -> vector<16x128xf32>
    %38 = vector.broadcast %8 : vector<1x128xf32> to vector<16x128xf32>
    %39 = arith.addf %37, %38 : vector<16x128xf32>
    %cst_23 = arith.constant 0.000000e+00 : f32
    %40 = vector.broadcast %cst_23 : f32 to vector<16x128xf32>
    %41 = arith.cmpf ogt, %39, %40 : vector<16x128xf32>
    %cst_24 = arith.constant 0.000000e+00 : f32
    %42 = vector.broadcast %cst_24 : f32 to vector<16x128xf32>
    %43 = arith.minimumf %39, %42 : vector<16x128xf32>
    %44 = math.exp %43 : vector<16x128xf32>
    %cst_25 = arith.constant 1.000000e+00 : f32
    %45 = vector.broadcast %cst_25 : f32 to vector<16x128xf32>
    %46 = arith.subf %44, %45 : vector<16x128xf32>
    %47 = arith.select %41, %39, %46 : vector<16x128xi1>, vector<16x128xf32>
    %cst_26 = arith.constant dense<0.000000e+00> : vector<16x128xf32>
    %48 = tpu.matmul %36, %6, %cst_26 {dimension_numbers = #tpu.dot_dimension_numbers<[1], [0], [0], [1], [0, 0, 1, 1], [], []>} : vector<16x128xbf16>, vector<128x128xbf16>, vector<16x128xf32> -> vector<16x128xf32>
    %49 = vector.broadcast %8 : vector<1x128xf32> to vector<16x128xf32>
    %50 = arith.addf %48, %49 : vector<16x128xf32>
    %cst_27 = arith.constant 0.000000e+00 : f32
    %51 = vector.broadcast %cst_27 : f32 to vector<16x128xf32>
    %52 = arith.cmpf ogt, %50, %51 : vector<16x128xf32>
    %cst_28 = arith.constant 0.000000e+00 : f32
    %53 = vector.broadcast %cst_28 : f32 to vector<16x128xf32>
    %54 = arith.minimumf %50, %53 : vector<16x128xf32>
    %55 = math.exp %54 : vector<16x128xf32>
    %cst_29 = arith.constant 1.000000e+00 : f32
    %56 = vector.broadcast %cst_29 : f32 to vector<16x128xf32>
    %57 = arith.subf %55, %56 : vector<16x128xf32>
    %58 = arith.select %52, %50, %57 : vector<16x128xi1>, vector<16x128xf32>
    %59 = arith.addf %47, %58 : vector<16x128xf32>
    %60 = arith.truncf %59 : vector<16x128xf32> to vector<16x128xbf16>
    %c0_30 = arith.constant 0 : index
    %c0_31 = arith.constant 0 : index
    %61 = vector.load %arg8[%c0_30, %c0_31] : memref<16x128xbf16, #tpu.memory_space<vmem>>, vector<16x128xbf16>
    tpu.vector_store %arg8[%c0_30, %c0_31], %60 {strides = array<i32>} : memref<16x128xbf16, #tpu.memory_space<vmem>>, vector<16x128xbf16>,
    return
  }
  func.func @transform_0(%arg0: i32) -> (i32, i32) {
    %c0_i32 = arith.constant 0 : i32
    %c0_i32_0 = arith.constant 0 : i32
    return %arg0, %c0_i32 : i32, i32
  }
  func.func @transform_1(%arg0: i32) -> (i32, i32) {
    %c0_i32 = arith.constant 0 : i32
    %c0_i32_0 = arith.constant 0 : i32
    return %arg0, %c0_i32 : i32, i32
  }
  func.func @transform_2(%arg0: i32) -> (i32, i32) {
    %c0_i32 = arith.constant 0 : i32
    %c0_i32_0 = arith.constant 0 : i32
    %c0_i32_1 = arith.constant 0 : i32
    return %c0_i32, %c0_i32_0 : i32, i32
  }
  func.func @transform_3(%arg0: i32) -> (i32, i32) {
    %c0_i32 = arith.constant 0 : i32
    %c0_i32_0 = arith.constant 0 : i32
    %c0_i32_1 = arith.constant 0 : i32
    return %c0_i32, %c0_i32_0 : i32, i32
  }
  func.func @transform_4(%arg0: i32) -> (i32, i32) {
    %c0_i32 = arith.constant 0 : i32
    %c0_i32_0 = arith.constant 0 : i32
    %c0_i32_1 = arith.constant 0 : i32
    return %c0_i32, %c0_i32_0 : i32, i32
  }
  func.func @transform_5(%arg0: i32) -> (i32, i32) {
    %c0_i32 = arith.constant 0 : i32
    %c0_i32_0 = arith.constant 0 : i32
    %c0_i32_1 = arith.constant 0 : i32
    return %c0_i32, %c0_i32_0 : i32, i32
  }
  func.func @transform_6(%arg0: i32) -> (i32, i32) {
    %c0_i32 = arith.constant 0 : i32
    %c0_i32_0 = arith.constant 0 : i32
    %c0_i32_1 = arith.constant 0 : i32
    return %c0_i32, %c0_i32_0 : i32, i32
  }
  func.func @transform_7(%arg0: i32) -> (i32, i32) {
    %c0_i32 = arith.constant 0 : i32
    %c0_i32_0 = arith.constant 0 : i32
    return %arg0, %c0_i32 : i32, i32
  }
}

</mosaic_0001>

<bundles_post_ra>
// kernel: lifted_edge_forward.1
= control target key start
LH: loop header
LB: loop body
LE: loop exit
PB: predicated region body
PF: predicated region fallthrough
CT: control target
= control target key end

     0   :  { %s1379_s24 = smov 0   ;;  %s1381_s25 = smov 0   ;;  %s1532_s0 = inlined_call_operand.vmem [shape: f32[56,6], index: 0, kind: input, shape index: {}]   ;;  %s1533_s1 = inlined_call_operand.vmem [shape: f32[56,6], index: 1, kind: input, shape index: {}]   ;;  %s1534_s2 = inlined_call_operand.vmem [shape: bf16[6,128], index: 2, kind: input, shape index: {}]   ;;  %s1535_s3 = inlined_call_operand.vmem [shape: bf16[6,128], index: 3, kind: input, shape index: {}]   ;;  %s1536_s4 = inlined_call_operand.vmem [shape: bf16[128,128], index: 4, kind: input, shape index: {}]   ;;  %s1537_s5 = inlined_call_operand.vmem [shape: f32[1,128], index: 5, kind: input, shape index: {}]   ;;  %s1538_s6 = inlined_call_operand.vmem [shape: f32[1,128], index: 6, kind: input, shape index: {}]   ;;  %s1539_s7 = inlined_call_operand.vmem [shape: bf16[56,128], index: 7, kind: output, shape index: {}]  }
   0x1   :  { %s1383_s26 = smov 0  }
   0x2 LB: > { %s1392_s27 = sadd.s32 4294967295, %s1303_s26   ;;  %s1394_s28 = sadd.s32 1, %s1303_s26   ;;  %s1303_s26 = sphi %s1383_s26, %s1543_s26   ;;  %s1299_s25 = sphi %s1381_s25, %s1542_s25   ;;  %s1295_s24 = sphi %s1379_s24, %s1541_s24  }
   0x3   : > { %s178_s29 = ssub.s32 %s1303_s26, %s1394_s28  ;;  %s181_s30 = sadd.s32 1, %s1299_s25 }
   0x4   : > { %p179_p0 = scmp.eq.s32.totalorder %s178_s29, 0  ;;  %p191_p1 = scmp.ne.s32.totalorder %s1299_s25, %s1295_s24 }
   0x5   : > { %p192_p2 = scmp.eq.s32.totalorder %s1392_s27, 3  ;;  %p988_p3 = scmp.ge.s32.totalorder %s1303_s26, 1 }
   0x6   : > { %s1402_s8 = scalar_select %p179_p0, %s1299_s25, %s181_s30  }
   0x7   : > { %p1404_p4 = por %p192_p2, %p191_p1  ;;  %p265_p5 = scmp.lt.s32.totalorder %s1303_s26, 5 }
   0x9   : > { %p266_p6 = pnand %p988_p3, %p265_p5 }
   0xa   : > { %v350_v0 = vld [vmem:[%s1535_s3] sm:$0x7] (!%p266_p6)  ;;  %vm373_vm0 = vcmask (!%p266_p6), 1042432   ;;  %v1337_v2 = vmov (!%p266_p6), 0.0   ;;  %s1417_s14 = sshll.u32 (!%p266_p6), %s1392_s27, 1  ;;  %vm1338_vm1 = vmmov (!%p266_p6), 0  }
   0xb   : > { %269 = sbr.rel (%p266_p6) target bundleno = 560 (0x230), region = 48  ;;  %v349_v1 = vld [vmem:[%s1534_s2] sm:$0x7] (!%p266_p6)  ;;  %1071 = vmatprep.subr.bf16.mxu0 (!%p266_p6), %v1337_v2  ;;  %1077 = vmatprep.subr.bf16.mxu1 (!%p266_p6), %v1337_v2  ;;  %v375_v3 = vsel (!%p266_p6), %vm373_vm0, %v350_v0, 0  ;;  %p314_p7 = scmp.lt.s32.totalorder (!%p266_p6), %s1417_s14, 6  ;;  %vm369_vm2 = vcmask (!%p266_p6), 48128  }
   0xc   : > { %v422_v4 = vsel (!%p266_p6), %vm373_vm0, %v349_v1, 0  ;;  %1072 = vmatpush3.bf16.msra.mxu0 (!%p266_p6), %v375_v3  ;;  %1073 = vmatprep.mubr.msk.bf16.mxu0 (!%p266_p6), %vm1338_vm1, %v1337_v2  ;;  %v1225_v11 = vld [vmem:[%s1536_s4] sm:$0xff] (!%p266_p6)   ;;  %v1226_v12 = vld [vmem:[%s1536_s4 + $0x8] sm:$0xff] (!%p266_p6)   ;;  %v1227_v13 = vld [vmem:[%s1536_s4 + $0x10] sm:$0xff] (!%p266_p6)   ;;  %s306_s10 = sand.u32 (!%p266_p6), 1, %s1295_s24  }
   0xd   : > { %1078 = vmatpush3.bf16.msra.mxu1 (!%p266_p6), %v422_v4  ;;  %1079 = vmatprep.mubr.msk.bf16.mxu1 (!%p266_p6), %vm1338_vm1, %v1337_v2  ;;  %v1228_v14 = vld [vmem:[%s1536_s4 + $0x18] sm:$0xff] (!%p266_p6)   ;;  %v1229_v15 = vld [vmem:[%s1536_s4 + $0x20] sm:$0xff] (!%p266_p6)   ;;  %v1230_v16 = vld [vmem:[%s1536_s4 + $0x28] sm:$0xff] (!%p266_p6)   ;;  %s989_s11 = sshll.u32 (!%p266_p6), %s306_s10, 3 }
   0xe   : > { %1083 = vmatprep.subr.bf16.mxu0 (!%p266_p6), %v1337_v2  ;;  %1089 = vmatprep.subr.bf16.mxu1 (!%p266_p6), %v1337_v2  ;;  %v1231_v17 = vld [vmem:[%s1536_s4 + $0x30] sm:$0xff] (!%p266_p6)   ;;  %v1232_v18 = vld [vmem:[%s1536_s4 + $0x38] sm:$0xff] (!%p266_p6)   ;;  %v998_v20 = vld [vmem:[%s1537_s5] ss:$0 sm:$0xff] (!%p266_p6)  ;;  %s1488_s12 = scalar_lea.vmem (!%p266_p6), [#allocation2], %s989_s11  }
  0x12   : > { %s315_s15 = scalar_select %p314_p7, %s1417_s14, 6 }
  0x13   : > { %s763_s24 = ssub.s32 (%p1404_p4), 7, %s1417_s14  ;;  %s1037_s13 = sshll.u32 (%p1404_p4), %s1392_s27, 3 }
  0x14   : > { %s991_s16 = sshll.u32 %s315_s15, 3  ;;  %p764_p8 = scmp.lt.s32.totalorder (%p1404_p4), %s763_s24, 2 }
  0x15   : > { %s331_s19 = scalar_lea.vmem %s1533_s1, %s991_s16  ;;  %s317_s22 = scalar_lea.vmem %s1532_s0, %s991_s16 }
  0x16   : > { %v346_v5 = vld [vmem:[%s331_s19] sm:$0xff]  ;;  %v347_v6 = vld [vmem:[%s331_s19 + $0x8] sm:$0xff]  ;;  %s1498_s17 = scalar_lea.vmem (%p1404_p4), %s1539_s7, %s1037_s13  }
  0x17   : > { %v343_v7 = vld [vmem:[%s317_s22] sm:$0xff]  ;;  %v348_v8 = vpack.c.bf16 %v347_v6, %v346_v5  ;;  %v344_v9 = vld [vmem:[%s317_s22 + $0x8] sm:$0xff] }
  0x18   : > { %v345_v10 = vpack.c.bf16 %v344_v9, %v343_v7 }
  0x19   : > { %1074 = vmatmul.mubr.msk.bf16.vlgmr.msra.gmra.mrb[0].mxu0 %vm369_vm2, %v348_v8 }
  0x1a   : > { %1080 = vmatmul.mubr.msk.bf16.vlgmr.msra.gmra.mrb[0].mxu1 %vm369_vm2, %v345_v10  ;;  %1084 = vmatpush3.bf16.msra.mxu0 %v375_v3 }
  0x1b   : > { %1090 = vmatpush3.bf16.msra.mxu1 %v422_v4  ;;  %1085 = vmatprep.mubr.msk.bf16.mxu0 %vm1338_vm1, %v1337_v2 }
  0x1c   : > { %1091 = vmatprep.mubr.msk.bf16.mxu1 %vm1338_vm1, %v1337_v2  ;;  %1095 = vmatprep.subr.bf16.mxu0 %v1337_v2 }
  0x1d   : > { %1115 = vmatprep.subr.bf16.mxu1 %v1337_v2 }
  0x21   : > { %1086 = vmatmul.mubr.msk.bf16.vlgmr.msra.gmra.mrb[4].mxu0 %vm369_vm2, %v345_v10 }
  0x22   : > { %1092 = vmatmul.mubr.msk.bf16.vlgmr.msra.gmra.mrb[4].mxu1 %vm369_vm2, %v348_v8  ;;  %1096 = vmatpush3.bf16.msra.mxu0 %v1225_v11 }
  0x23   : > { %1097 = vmatprep.subr.bf16.mxu0 %v1337_v2  ;;  %1116 = vmatpush3.bf16.msra.mxu1 %v1225_v11 }
  0x24   : > { %1117 = vmatprep.subr.bf16.mxu1 %v1337_v2  ;;  %1111 = vmatprep.mubr.msk.bf16.mxu0 %vm1338_vm1, %v1337_v2 }
  0x25   : > { %1131 = vmatprep.mubr.msk.bf16.mxu1 %vm1338_vm1, %v1337_v2 }
  0x26   : > { %1098 = vmatpush3.bf16.msra.mxu0 %v1226_v12 }
  0x27   : > { %1118 = vmatpush3.bf16.msra.mxu1 %v1226_v12  ;;  %1099 = vmatprep.subr.bf16.mxu0 %v1337_v2 }
  0x28   : > { %1119 = vmatprep.subr.bf16.mxu1 %v1337_v2 }
  0x2a   : > { %1100 = vmatpush3.bf16.msra.mxu0 %v1227_v13 }
  0x2b   : > { %1120 = vmatpush3.bf16.msra.mxu1 %v1227_v13  ;;  %1101 = vmatprep.subr.bf16.mxu0 %v1337_v2 }
  0x2c   : > { %1121 = vmatprep.subr.bf16.mxu1 %v1337_v2 }
  0x2e   : > { %1102 = vmatpush3.bf16.msra.mxu0 %v1228_v14 }
  0x2f   : > { %1122 = vmatpush3.bf16.msra.mxu1 %v1228_v14  ;;  %1103 = vmatprep.subr.bf16.mxu0 %v1337_v2 }
  0x30   : > { %1123 = vmatprep.subr.bf16.mxu1 %v1337_v2 }
  0x32   : > { %1104 = vmatpush3.bf16.msra.mxu0 %v1229_v15 }
  0x33   : > { %1124 = vmatpush3.bf16.msra.mxu1 %v1229_v15  ;;  %1105 = vmatprep.subr.bf16.mxu0 %v1337_v2 }
  0x34   : > { %1125 = vmatprep.subr.bf16.mxu1 %v1337_v2 }
  0x36   : > { %1106 = vmatpush3.bf16.msra.mxu0 %v1230_v16 }
  0x37   : > { %1126 = vmatpush3.bf16.msra.mxu1 %v1230_v16  ;;  %1107 = vmatprep.subr.bf16.mxu0 %v1337_v2 }
  0x38   : > { %1127 = vmatprep.subr.bf16.mxu1 %v1337_v2 }
  0x3a   : > { %1108 = vmatpush3.bf16.msra.mxu0 %v1231_v17 }
  0x3b   : > { %1128 = vmatpush3.bf16.msra.mxu1 %v1231_v17  ;;  %1109 = vmatprep.subr.bf16.mxu0 %v1337_v2 }
  0x3c   : > { %1129 = vmatprep.subr.bf16.mxu1 %v1337_v2  ;;  %v1003_v2 = vld [vmem:[%s1538_s6] ss:$0 sm:$0xff] }
  0x3e   : > { %1110 = vmatpush3.bf16.msra.mxu0 %v1232_v18 }
  0x3f   : > { %1130 = vmatpush3.bf16.msra.mxu1 %v1232_v18 }
  0xec   : > { %v411_v19 = vpop.f32.mrb[0].mxu0 }
  0xed   : > { %v458_v21 = vpop.f32.mrb[0].mxu1  ;;  %v1075_v22 = vpop.f32.mrb[1].mxu0 }
  0xee   : > { %v459_v23 = vadd.f32 %v458_v21, %v411_v19  ;;  %v1081_v24 = vpop.f32.mrb[1].mxu1  ;;  %v414_v25 = vpop.f32.mrb[2].mxu0 }
  0xef   : > { %v461_v26 = vpop.f32.mrb[2].mxu1  ;;  %v1076_v27 = vpop.f32.mrb[3].mxu0 }
  0xf0   : > { %v553_v28 = vadd.f32 %v998_v20, %v459_v23  ;;  %v462_v29 = vadd.f32 %v461_v26, %v414_v25  ;;  %v1082_v30 = vpop.f32.mrb[3].mxu1 }
  0xf2   : > { %v557_v31 = vmin.f32 %v553_v28, 0.0  ;;  %v554_v32 = vadd.f32 %v998_v20, %v462_v29  ;;  %vm555_vm3 = vcmp.gt.f32.partialorder %v553_v28, 0.0 }
  0xf4   : > { %v559_v33 = vmul.f32 1.442695, %v557_v31  ;;  %v558_v34 = vmin.f32 %v554_v32, 0.0  ;;  %v499_v35 = vpop.f32.mrb[4].mxu0  ;;  %vm556_vm4 = vcmp.gt.f32.partialorder %v554_v32, 0.0 }
  0xf5   : > { %v540_v36 = vpop.f32.mrb[4].mxu1  ;;  %v1087_v37 = vpop.f32.mrb[5].mxu0 }
  0xf6   : > { %1233 = vpow2.f32 %v559_v33  ;;  %v561_v38 = vmul.f32 1.442695, %v558_v34  ;;  %v541_v39 = vadd.f32 %v540_v36, %v499_v35  ;;  %v1093_v40 = vpop.f32.mrb[5].mxu1  ;;  %v502_v41 = vpop.f32.mrb[6].mxu0 }
  0xf7   : > { %v543_v42 = vpop.f32.mrb[6].mxu1  ;;  %v1088_v43 = vpop.f32.mrb[7].mxu0 }
  0xf8   : > { %1235 = vpow2.f32 %v561_v38  ;;  %v568_v44 = vadd.f32 %v998_v20, %v541_v39  ;;  %v544_v45 = vadd.f32 %v543_v42, %v502_v41  ;;  %v1094_v46 = vpop.f32.mrb[7].mxu1 }
  0xfa   : > { %v572_v47 = vmin.f32 %v568_v44, 0.0  ;;  %v569_v48 = vadd.f32 %v998_v20, %v544_v45  ;;  %vm570_vm5 = vcmp.gt.f32.partialorder %v568_v44, 0.0 }
  0xfc   : > { %v574_v49 = vmul.f32 1.442695, %v572_v47  ;;  %v573_v50 = vmin.f32 %v569_v48, 0.0  ;;  %vm571_vm6 = vcmp.gt.f32.partialorder %v569_v48, 0.0 }
  0xfe   : > { %1237 = vpow2.f32 %v574_v49  ;;  %v576_v51 = vmul.f32 1.442695, %v573_v50 }
 0x100   : > { %v1234_v52 = vpop.eup %1233  ;;  %1239 = vpow2.f32 %v576_v51 }
 0x101   : > { %v999_v53 = vadd.f32 -1.0, %v1234_v52 }
 0x102   : > { %v1236_v54 = vpop.eup %1235 }
 0x103   : > { %v1000_v55 = vadd.f32 -1.0, %v1236_v54  ;;  %v565_v56 = vsel %vm555_vm3, %v553_v28, %v999_v53 }
 0x105   : > { %v566_v57 = vsel %vm556_vm4, %v554_v32, %v1000_v55 }
 0x106   : > { %v567_v58 = vpack.c.bf16 %v566_v57, %v565_v56 }
 0x108   : > { %v1238_v59 = vpop.eup %1237  ;;  %1112 = vmatmul.mubr.bf16.vlgmr.msra.gmra.mrb[8].mxu0 %v567_v58 }
 0x109   : > { %v1001_v60 = vadd.f32 -1.0, %v1238_v59 }
 0x10a   : > { %v1240_v61 = vpop.eup %1239 }
 0x10b   : > { %v1002_v62 = vadd.f32 -1.0, %v1240_v61  ;;  %v580_v63 = vsel %vm570_vm5, %v568_v44, %v1001_v60 }
 0x10d   : > { %v581_v0 = vsel %vm571_vm6, %v569_v48, %v1002_v62 }
 0x10e   : > { %v582_v1 = vpack.c.bf16 %v581_v0, %v580_v63 }
 0x110   : > { %1132 = vmatmul.mubr.bf16.vlgmr.msra.gmra.mrb[8].mxu1 %v582_v1 }
 0x1db   : > { %v671_v3 = vpop.f32.mrb[8].mxu0 }
 0x1dc   : > { %v672_v4 = vadd.f32 %v1003_v2, %v671_v3  ;;  %v1113_v5 = vpop.f32.mrb[9].mxu0 }
 0x1dd   : > { %v674_v6 = vpop.f32.mrb[10].mxu0 }
 0x1de   : > { %v680_v7 = vmin.f32 %v672_v4, 0.0  ;;  %v675_v8 = vadd.f32 %v1003_v2, %v674_v6  ;;  %v1114_v9 = vpop.f32.mrb[11].mxu0  ;;  %vm678_vm7 = vcmp.gt.f32.partialorder %v672_v4, 0.0 }
 0x1e0   : > { %v681_v10 = vmin.f32 %v675_v8, 0.0  ;;  %v682_v11 = vmul.f32 1.442695, %v680_v7  ;;  %vm679_vm9 = vcmp.gt.f32.partialorder %v675_v8, 0.0 }
 0x1e2   : > { %v684_v13 = vmul.f32 1.442695, %v681_v10  ;;  %1241 = vpow2.f32 %v682_v11 }
 0x1e3   : > { %v724_v12 = vpop.f32.mrb[8].mxu1 }
 0x1e4   : > { %v725_v14 = vadd.f32 %v1003_v2, %v724_v12  ;;  %v1133_v15 = vpop.f32.mrb[9].mxu1  ;;  %1243 = vpow2.f32 %v684_v13 }
 0x1e5   : > { %v727_v16 = vpop.f32.mrb[10].mxu1 }
 0x1e6   : > { %v733_v17 = vmin.f32 %v725_v14, 0.0  ;;  %v728_v18 = vadd.f32 %v1003_v2, %v727_v16  ;;  %v1134_v19 = vpop.f32.mrb[11].mxu1  ;;  %vm731_vm8 = vcmp.gt.f32.partialorder %v725_v14, 0.0 }
 0x1e8   : > { %v735_v20 = vmul.f32 1.442695, %v733_v17  ;;  %v734_v21 = vmin.f32 %v728_v18, 0.0  ;;  %vm732_vm10 = vcmp.gt.f32.partialorder %v728_v18, 0.0 }
 0x1ea   : > { %1245 = vpow2.f32 %v735_v20  ;;  %v737_v22 = vmul.f32 1.442695, %v734_v21 }
 0x1ec   : > { %1247 = vpow2.f32 %v737_v22  ;;  %v1242_v23 = vpop.eup %1241 }
 0x1ed   : > { %v1012_v25 = vadd.f32 -1.0, %v1242_v23 }
 0x1ee   : > { %v1244_v24 = vpop.eup %1243 }
 0x1ef   : > { %v1013_v27 = vadd.f32 -1.0, %v1244_v24  ;;  %v688_v30 = vsel %vm678_vm7, %v672_v4, %v1012_v25 }
 0x1f1   : > { %v689_v34 = vsel %vm679_vm9, %v675_v8, %v1013_v27 }
 0x1f4   : > { %v1246_v26 = vpop.eup %1245 }
 0x1f5   : > { %v1014_v28 = vadd.f32 -1.0, %v1246_v26 }
 0x1f6   : > { %v1248_v29 = vpop.eup %1247 }
 0x1f7   : > { %v741_v31 = vsel %vm731_vm8, %v725_v14, %v1014_v28  ;;  %v1015_v32 = vadd.f32 -1.0, %v1248_v29 }
 0x1f8   : > { %v743_v33 = vadd.f32 %v741_v31, %v688_v30  ;;  %761 = sbr.rel (!%p1404_p4) target bundleno = 560 (0x230), region = 52 }
 0x1f9   : > { %v742_v35 = vsel %vm732_vm10, %v728_v18, %v1015_v32 }
 0x1fa   : > { %v744_v36 = vadd.f32 %v742_v35, %v689_v34 }
 0x1fc   : > { %v1043_v37 = vpack.c.bf16 %v744_v36, %v743_v33 }
 0x1fe   : > { %1044 = vst [vmem:[%s1488_s12] sm:$0xff] %v1043_v37  }
 0x1ff   : > { %s1545_s24 = smov (!%p764_p8, %s763_s24), 2 }
 0x200   : > { %s1020_s18 = sshll.u32 %s1545_s24, 6 }
 0x201   : > { %p1023_p9 = scmp.eq.s32.totalorder %s1020_s18, 0 }
 0x202   : > { %s1504_s19 = sshrl.u32 (!%p1023_p9), %s1545_s24, 1 }
 0x203   : > { %772 = sbr.rel (%p1023_p9) target bundleno = 560 (0x230), region = 56  ;;  %p1024_p10 = scmp.le.s32.totalorder (!%p1023_p9), %s1504_s19, 0 }
 0x20a   : > { %935 = sbr.rel (%p1024_p10) target bundleno = 539 (0x21b), region = 131  ;;  %s1305_s27 = smov (!%p1024_p10), %s1498_s17  }
 0x20b   : > { %s1309_s9 = smov (!%p1024_p10), %s1488_s12   ;;  %s1313_s14 = smov (!%p1024_p10), 0  }
 0x20c   : > { %s1317_s20 = smov (!%p1024_p10), 0  }
 0x211 LB: >> { %v788_v38 = vld [vmem:[%s1311_s9] sm:$0xf]  ;;  %v790_v39 = vld [vmem:[%s1311_s9 + $0x4] sm:$0xf]  ;;  %s792_s21 = sadd.s32 1, %s1315_s14  ;;  %s782_s20 = sadd.s32 1, %s1319_s20   ;;  %s1319_s20 = sphi %s1317_s20, %s782_s20   ;;  %s1315_s14 = sphi %s1313_s14, %s1314_s14   ;;  %s1311_s9 = sphi %s1309_s9, %s797_s9   ;;  %s1307_s27 = sphi %s1305_s27, %s798_s27  }
 0x212   : >> { %789 = vst [vmem:[%s1307_s27] sm:$0xf] %v788_v38  ;;  %791 = vst [vmem:[%s1307_s27 + $0x4] sm:$0xf] %v790_v39  ;;  %p793_p11 = scmp.ge.s32.totalorder %s792_s21, %s1504_s19  ;;  %p781_p12 = scmp.ge.s32.totalorder %s782_s20, %s1504_s19 }
 0x214   : >> { %s1547_s21 = smov (%p793_p11, %s792_s21), 0  ;;  %784 = sbr.rel (!%p781_p12) target bundleno = 529 (0x211), region = 137 }
 0x215   : >> { %s1025_s22 = sshll.u32 %s1547_s21, 3  ;;  %s1314_s14 = smov %s1547_s21  }
 0x216   : >> { %s797_s9 = scalar_lea.vmem %s1488_s12, %s1025_s22 [#allocation2]   ;;  %s798_s27 = scalar_lea.vmem %s1498_s17, %s1025_s22  }
 0x21b PF: > { %s1514_s23 = sand.u32 1, %s1545_s24   ;;  %s1038_s26 = sshll.u32 %s1504_s19, 3 }
 0x21c   : > { %s803_s29 = scalar_lea.vmem %s1488_s12, %s1038_s26 [#allocation2]   ;;  %s805_s30 = scalar_lea.vmem %s1498_s17, %s1038_s26  }
 0x21d   : > { %p1030_p13 = scmp.le.s32.totalorder %s1514_s23, 0 }
 0x21e   : > { %s1321_s10 = smov (!%p1030_p13), %s805_s30   ;;  %s1325_s11 = smov (!%p1030_p13), %s803_s29  }
 0x21f   : > { %949 = sbr.rel (%p1030_p13) target bundleno = 560 (0x230), region = 142  ;;  %s1329_s13 = smov (!%p1030_p13), 0  }
 0x220   : > { %s1333_s15 = smov (!%p1030_p13), 0  }
 0x226 LB: >> { %v815_v40 = vld [vmem:[%s1327_s11] sm:$0xf]  ;;  %s817_s24 = sadd.s32 1, %s1331_s13  ;;  %s809_s15 = sadd.s32 1, %s1335_s15   ;;  %s1335_s15 = sphi %s1333_s15, %s809_s15   ;;  %s1331_s13 = sphi %s1329_s13, %s1330_s13   ;;  %s1327_s11 = sphi %s1325_s11, %s822_s11   ;;  %s1323_s10 = sphi %s1321_s10, %s823_s10  }
 0x227   : >> { %816 = vst [vmem:[%s1323_s10] sm:$0xf] %v815_v40  ;;  %p818_p0 = scmp.ge.s32.totalorder %s817_s24, %s1514_s23  ;;  %p808_p1 = scmp.ge.s32.totalorder %s809_s15, %s1514_s23 }
 0x229   : >> { %s1549_s24 = smov (%p818_p0, %s817_s24), 0  ;;  %811 = sbr.rel (!%p808_p1) target bundleno = 550 (0x226), region = 148 }
 0x22a   : >> { %s1031_s12 = sshll.u32 %s1549_s24, 2  ;;  %s1330_s13 = smov %s1549_s24  }
 0x22b   : >> { %s822_s11 = scalar_lea.vmem %s803_s29, %s1031_s12 [#allocation2]   ;;  %s823_s10 = scalar_lea.vmem %s805_s30, %s1031_s12  }
 0x230 PF: > { %p14_p2 = scmp.ge.s32.totalorder %s1394_s28, 6   ;;  %s1541_s24 = smov %s1299_s25 }
 0x231   : > { %s1542_s25 = smov %s1402_s8  ;;  %s1543_s26 = smov %s1394_s28 }
 0x232   :  { %16 = sbr.rel (!%p14_p2) target bundleno = 2 (0x2), region = 159 }

</bundles_post_ra>
